<compile_context>
chip_gen: v7x
topology: tpu7x:2x2x1
jax: 0.10.0
libtpu: 0.0.40
codegen_flags: <defaults>
</compile_context>

<pallas_src>
import functools

import jax
import jax.numpy as jnp
import numpy as np
from jax import lax
from jax.experimental import pallas as pl
from jax.experimental.pallas import tpu as pltpu


def _round_up(x, m):
    return ((x + m - 1) // m) * m


def _doc_mean_kernel(ids_ref, table_ref, out_ref, acc_ref, *, cs):
    # ids_ref   : VMEM (BM, S_p)     int32   (pad = -1)
    # table_ref : VMEM (TV, dim_p)   bf16    (vocab tile `v`)
    # out_ref   : VMEM (BM, dim_p)   f32     (resident across vocab axis)
    # acc_ref   : VMEM (BM, dim_p)   f32     scratch accumulator
    v = pl.program_id(1)

    @pl.when(v == 0)
    def _init():
        acc_ref[...] = jnp.zeros_like(acc_ref)

    bm, seq_p = ids_ref.shape
    tv = table_ref.shape[0]
    vocab_iota = v * tv + lax.broadcasted_iota(jnp.int32, (1, 1, tv), 2)

    # Chunked one-hot count build: never materialize the full (BM, S, TV)
    # compare tensor.  Padding ids (-1) and ids outside this vocab tile match
    # nothing -> contribute 0 (built-in bounds safety).
    n_chunks = seq_p // cs
    counts = jnp.zeros((bm, tv), jnp.float32)
    for c in range(n_chunks):                     # static, fully unrolled
        ids_c = ids_ref[:, c * cs:(c + 1) * cs]                  # (BM, CS)
        eq = (ids_c[:, :, None] == vocab_iota)                   # (BM, CS, TV)
        counts = counts + jnp.sum(eq.astype(jnp.float32), axis=1)

    # MXU: (BM, TV) @ (TV, dim_p) in bf16, f32 accumulation (P3 pattern).
    # Counts are small exact integers (<= seq) -> lossless in bf16.
    acc_ref[...] += jnp.dot(counts.astype(table_ref.dtype), table_ref[...],
                            preferred_element_type=jnp.float32)

    @pl.when(v == pl.num_programs(1) - 1)
    def _finalize():
        # Per-doc token count from the pad convention; guard empty docs.
        n_tok = jnp.sum((ids_ref[...] >= 0).astype(jnp.float32),
                        axis=1, keepdims=True)                    # (BM, 1)
        inv = pl.reciprocal(jnp.maximum(n_tok, 1.0), approx=True)
        out_ref[...] = acc_ref[...] * inv


def prepare_table(table, *, tv=1024, dtype=jnp.bfloat16):
    """Model-load-time prep: pad (vocab -> mult of TV, dim -> mult of 128)
    and cast to bf16 so the per-call wrapper never touches the full table."""
    vocab, dim = table.shape
    tv = min(tv, _round_up(vocab, 128))
    vocab_p = _round_up(vocab, tv)
    dim_p = _round_up(dim, 128)
    table_p = jnp.pad(table.astype(jnp.float32),
                      ((0, vocab_p - vocab), (0, dim_p - dim))).astype(dtype)
    return table_p, tv, dim


def enc_medspacy_forward(token_ids, table_p, tv, dim, *, bm=128, cs=8):
    """token_ids: (batch, seq) int32 (pad = -1); table_p/tv/dim from
    prepare_table()  ->  (batch, dim) f32 (mean token vector per doc)."""
    batch, seq = token_ids.shape
    vocab_p, dim_p = table_p.shape

    cs = max(1, min(cs, seq))
    seq_p = _round_up(seq, cs)
    bm = min(bm, _round_up(batch, 8))          # sublane-dense batch blocks
    batch_p = _round_up(batch, bm)

    ids_p = jnp.pad(token_ids.astype(jnp.int32),
                    ((0, batch_p - batch), (0, seq_p - seq)),
                    constant_values=-1)

    grid = (batch_p // bm, vocab_p // tv)      # batch parallel, vocab reduce
    grid_spec = pltpu.PrefetchScalarGridSpec(
        num_scalar_prefetch=0,
        grid=grid,
        in_specs=[
            pl.BlockSpec((bm, seq_p), lambda b, v: (b, 0)),      # ids
            pl.BlockSpec((tv, dim_p), lambda b, v: (v, 0)),      # table tile
        ],
        out_specs=pl.BlockSpec((bm, dim_p), lambda b, v: (b, 0)),
        scratch_shapes=[pltpu.VMEM((bm, dim_p), jnp.float32)],
    )
    out = pl.pallas_call(
        functools.partial(_doc_mean_kernel, cs=cs),
        out_shape=jax.ShapeDtypeStruct((batch_p, dim_p), jnp.float32),
        grid_spec=grid_spec,
        compiler_params=pltpu.CompilerParams(
            dimension_semantics=("parallel", "arbitrary"),
            vmem_limit_bytes=48 * 1024 * 1024),
    )(ids_p, table_p)
    return out[:batch, :dim]


if __name__ == "__main__":
    # Small deterministic setup (dim=300 mimics spaCy md vectors and
    # exercises the pad-to-128 path; one doc is shorter than seq to exercise
    # padding + per-doc length normalization).
    batch, seq, vocab, dim = 2, 8, 64, 300

    key = jax.random.PRNGKey(0)
    k_tab, k_ids = jax.random.split(key)
    table = jax.random.normal(k_tab, (vocab, dim), dtype=jnp.float32)
    token_ids = jax.random.randint(k_ids, (batch, seq), 0, vocab,
                                   dtype=jnp.int32)
    lengths = jnp.array([5, 8], dtype=jnp.int32)
    pos = jnp.arange(seq, dtype=jnp.int32)[None, :]
    token_ids = jnp.where(pos < lengths[:, None], token_ids, -1)  # pad = -1

    table_p, tv, dim_out = prepare_table(table)       # once, at "model load"
    out = enc_medspacy_forward(token_ids, table_p, tv, dim_out)
    out = jax.block_until_ready(out)

    # Reference: spaCy doc.vector == mean of the doc's (real) token vectors.
    # Table compared through the same bf16 cast the kernel uses; tolerance
    # covers f32 MXU accumulation + the approximate (EUP) reciprocal.
    tab_np = np.asarray(table.astype(jnp.bfloat16).astype(jnp.float32))
    ids_np = np.asarray(token_ids)
    len_np = np.asarray(lengths)
    ref = np.stack([tab_np[ids_np[b, :len_np[b]]].mean(axis=0)
                    for b in range(batch)])
    np.testing.assert_allclose(np.asarray(out), ref, rtol=2e-3, atol=2e-3)

    print("KERNEL_OK")
</pallas_src>

<mosaic_0001>
module attributes {stable_mosaic.version = 11 : i64} {
  func.func @_doc_mean_kernel(%arg0: i32, %arg1: i32, %arg2: memref<8x8xi32, #tpu.memory_space<vmem>>, %arg3: memref<128x384xbf16, #tpu.memory_space<vmem>>, %arg4: memref<8x384xf32, #tpu.memory_space<vmem>>, %arg5: memref<8x384xf32, #tpu.memory_space<vmem>>) attributes {dimension_semantics = [#tpu.dimension_semantics<parallel>, #tpu.dimension_semantics<arbitrary>], iteration_bounds = array<i64: 1, 1>, scalar_prefetch = 0 : i64, scratch_operands = 1 : i64, tpu.core_type = #tpu.core_type<tc>, window_params = [{transform_indices = @transform_0, window_bounds = array<i64: 8, 8>}, {transform_indices = @transform_1, window_bounds = array<i64: 128, 384>}, {transform_indices = @transform_2, window_bounds = array<i64: 8, 384>}]} {
    %c0_i32 = arith.constant 0 : i32
    %0 = arith.cmpi eq, %arg1, %c0_i32 : i32
    %1 = arith.extui %0 : i1 to i32
    %c0_i32_0 = arith.constant 0 : i32
    %2 = arith.cmpi ne, %1, %c0_i32_0 : i32
    scf.if %2 {
      %cst_12 = arith.constant 0.000000e+00 : f32
      %26 = vector.broadcast %cst_12 : f32 to vector<8x384xf32>
      %c0_13 = arith.constant 0 : index
      %c0_14 = arith.constant 0 : index
      %27 = vector.load %arg5[%c0_13, %c0_14] : memref<8x384xf32, #tpu.memory_space<vmem>>, vector<8x384xf32>
      tpu.vector_store %arg5[%c0_13, %c0_14], %26 {strides = array<i32>} : memref<8x384xf32, #tpu.memory_space<vmem>>, vector<8x384xf32>,
    } else {
    }
    %c128_i32 = arith.constant 128 : i32
    %3 = arith.muli %arg1, %c128_i32 : i32
    %4 = tpu.iota {dimensions = array<i32: 2>} : vector<1x1x128xi32>
    %5 = vector.broadcast %3 : i32 to vector<1x1x128xi32>
    %6 = arith.addi %5, %4 : vector<1x1x128xi32>
    %cst = arith.constant 0.000000e+00 : f32
    %7 = vector.broadcast %cst : f32 to vector<8x128xf32>
    %c0 = arith.constant 0 : index
    %c0_1 = arith.constant 0 : index
    %8 = vector.load %arg2[%c0, %c0_1] : memref<8x8xi32, #tpu.memory_space<vmem>>, vector<8x8xi32>
    %9 = vector.shape_cast %8 : vector<8x8xi32> to vector<8x8x1xi32>
    %10 = vector.broadcast %9 : vector<8x8x1xi32> to vector<8x8x128xi32>
    %11 = vector.broadcast %6 : vector<1x1x128xi32> to vector<8x8x128xi32>
    %12 = arith.cmpi eq, %10, %11 : vector<8x8x128xi32>
    %13 = arith.extui %12 : vector<8x8x128xi1> to vector<8x8x128xi32>
    %14 = arith.sitofp %13 : vector<8x8x128xi32> to vector<8x8x128xf32>
    %cst_2 = arith.constant dense<0.000000e+00> : vector<8x128xf32>
    %15 = vector.multi_reduction <add>, %14, %cst_2 [1] : vector<8x8x128xf32> to vector<8x128xf32>
    %16 = arith.addf %7, %15 : vector<8x128xf32>
    %c0_3 = arith.constant 0 : index
    %c0_4 = arith.constant 0 : index
    %17 = vector.load %arg5[%c0_3, %c0_4] : memref<8x384xf32, #tpu.memory_space<vmem>>, vector<8x384xf32>
    %18 = arith.truncf %16 : vector<8x128xf32> to vector<8x128xbf16>
    %c0_5 = arith.constant 0 : index
    %c0_6 = arith.constant 0 : index
    %19 = vector.load %arg3[%c0_5, %c0_6] : memref<128x384xbf16, #tpu.memory_space<vmem>>, vector<128x384xbf16>
    %cst_7 = arith.constant dense<0.000000e+00> : vector<8x384xf32>
    %20 = tpu.matmul %18, %19, %cst_7 {dimension_numbers = #tpu.dot_dimension_numbers<[1], [0], [0], [1], [0, 0, 1, 1], [], []>} : vector<8x128xbf16>, vector<128x384xbf16>, vector<8x384xf32> -> vector<8x384xf32>
    %21 = arith.addf %17, %20 : vector<8x384xf32>
    %c0_8 = arith.constant 0 : index
    %c0_9 = arith.constant 0 : index
    %22 = vector.load %arg5[%c0_8, %c0_9] : memref<8x384xf32, #tpu.memory_space<vmem>>, vector<8x384xf32>
    tpu.vector_store %arg5[%c0_8, %c0_9], %21 {strides = array<i32>} : memref<8x384xf32, #tpu.memory_space<vmem>>, vector<8x384xf32>,
    %c0_i32_10 = arith.constant 0 : i32
    %23 = arith.cmpi eq, %arg1, %c0_i32_10 : i32
    %24 = arith.extui %23 : i1 to i32
    %c0_i32_11 = arith.constant 0 : i32
    %25 = arith.cmpi ne, %24, %c0_i32_11 : i32
    scf.if %25 {
      %c0_12 = arith.constant 0 : index
      %c0_13 = arith.constant 0 : index
      %26 = vector.load %arg2[%c0_12, %c0_13] : memref<8x8xi32, #tpu.memory_space<vmem>>, vector<8x8xi32>
      %c0_i32_14 = arith.constant 0 : i32
      %27 = vector.broadcast %c0_i32_14 : i32 to vector<8x8xi32>
      %28 = arith.cmpi sge, %26, %27 : vector<8x8xi32>
      %29 = arith.extui %28 : vector<8x8xi1> to vector<8x8xi32>
      %30 = arith.sitofp %29 : vector<8x8xi32> to vector<8x8xf32>
      %cst_15 = arith.constant dense<0.000000e+00> : vector<8xf32>
      %31 = vector.multi_reduction <add>, %30, %cst_15 [1] : vector<8x8xf32> to vector<8xf32>
      %32 = vector.shape_cast %31 : vector<8xf32> to vector<8x1xf32>
      %cst_16 = arith.constant 1.000000e+00 : f32
      %33 = vector.broadcast %cst_16 : f32 to vector<8x1xf32>
      %34 = arith.maximumf %32, %33 : vector<8x1xf32>
      %35 = tpu.reciprocal %34 {approx = true} : vector<8x1xf32> -> vector<8x1xf32>
      %c0_17 = arith.constant 0 : index
      %c0_18 = arith.constant 0 : index
      %36 = vector.load %arg5[%c0_17, %c0_18] : memref<8x384xf32, #tpu.memory_space<vmem>>, vector<8x384xf32>
      %37 = vector.broadcast %35 : vector<8x1xf32> to vector<8x384xf32>
      %38 = arith.mulf %36, %37 : vector<8x384xf32>
      %c0_19 = arith.constant 0 : index
      %c0_20 = arith.constant 0 : index
      %39 = vector.load %arg4[%c0_19, %c0_20] : memref<8x384xf32, #tpu.memory_space<vmem>>, vector<8x384xf32>
      tpu.vector_store %arg4[%c0_19, %c0_20], %38 {strides = array<i32>} : memref<8x384xf32, #tpu.memory_space<vmem>>, vector<8x384xf32>,
    } else {
    }
    return
  }
  func.func @transform_0(%arg0: i32, %arg1: i32) -> (i32, i32) {
    %c0_i32 = arith.constant 0 : i32
    %c0_i32_0 = arith.constant 0 : i32
    return %arg0, %c0_i32 : i32, i32
  }
  func.func @transform_1(%arg0: i32, %arg1: i32) -> (i32, i32) {
    %c0_i32 = arith.constant 0 : i32
    %c0_i32_0 = arith.constant 0 : i32
    return %arg1, %c0_i32 : i32, i32
  }
  func.func @transform_2(%arg0: i32, %arg1: i32) -> (i32, i32) {
    %c0_i32 = arith.constant 0 : i32
    %c0_i32_0 = arith.constant 0 : i32
    return %arg0, %c0_i32 : i32, i32
  }
}

</mosaic_0001>

<bundles_post_ra>
// kernel: tpu_custom_call.1
= control target key start
LH: loop header
LB: loop body
LE: loop exit
PB: predicated region body
PF: predicated region fallthrough
CT: control target
= control target key end

     0   :  { %7 = vsyncpa [#allocation4], 0  ;;  %s789_s0 = inlined_call_operand.hbm [shape: s32[8,8], index: 0, kind: input, shape index: {}]   ;;  %s790_s1 = inlined_call_operand.hbm [shape: bf16[128,384], index: 1, kind: input, shape index: {}]   ;;  %s791_s2 = inlined_call_operand.hbm [shape: f32[8,384], index: 2, kind: output, shape index: {}]  }
   0x1   :  { %8 = vsyncpa [#allocation7], 0 }
   0x2   :  { %9 = vsyncpa [#allocation5], 0  ;;  %s692_s9 = smov [#allocation3]   ;;  %s693_s11 = smov [#allocation6]  }
   0x3   :  { %s16_s10 = sshll.u32 %s692_s9, 4  ;;  %s25_s12 = sshll.u32 %s693_s11, 4  ;;  %s17_s10 = int_to_ptr.vmem [resolvable:$true] %s16_s10  ;;  %s715_s12 = int_to_ptr.vmem [resolvable:$true] %s25_s12 }
   0x4   :  { %s620_s15 = scalar_lea.hbm %s789_s0, 128 }
   0x5   :  { %p621_p0 = scmp.ne.s32.totalorder %s789_s0, %s620_s15  ;;  %p624_p1 = scmp.lt.u32.totalorder %s620_s15, %s789_s0 }
   0x7   :  { %p626_p2 = pnand %p624_p1, %p621_p0 }
   0x9   :  { %629 = shalt.err (!%p626_p2)
}
   0xa   :  { %s630_s20 = scalar_lea.vmem %s17_s10, 128  ;;  %p635_p4 = scmp.lt.s32.totalorder %s17_s10, %s17_s10 }
   0xb   :  { %p631_p3 = scmp.ne.s32.totalorder %s17_s10, %s630_s20  ;;  %p636_p5 = scmp.lt.s32.totalorder %s630_s20, %s630_s20 }
   0xd   :  { %p637_p6 = por %p636_p5, %p635_p4 }
   0xf   :  { %p638_p7 = pnand %p637_p6, %p631_p3 }
  0x11   :  { %641 = shalt.err (!%p638_p7)
}
  0x12   :  { %19 = dma.hbm_to_vmem [thread:$0]  %s789_s0, 128, %s17_s10, [#allocation4]  }
  0x13   :  { %s642_s25 = scalar_lea.hbm %s790_s1, 3072 }
  0x14   :  { %p643_p8 = scmp.ne.s32.totalorder %s790_s1, %s642_s25  ;;  %p646_p9 = scmp.lt.u32.totalorder %s642_s25, %s790_s1 }
  0x16   :  { %p648_p10 = pnand %p646_p9, %p643_p8 }
  0x18   :  { %651 = shalt.err (!%p648_p10)
}
  0x19   :  { %s652_s30 = scalar_lea.vmem %s715_s12, 3072  ;;  %p657_p12 = scmp.lt.s32.totalorder %s715_s12, %s715_s12 }
  0x1a   :  { %p653_p11 = scmp.ne.s32.totalorder %s715_s12, %s652_s30  ;;  %p658_p13 = scmp.lt.s32.totalorder %s652_s30, %s652_s30 }
  0x1c   :  { %p659_p0 = por %p658_p13, %p657_p12 }
  0x1e   :  { %p660_p1 = pnand %p659_p0, %p653_p11 }
  0x20   :  { %663 = shalt.err (!%p660_p1)
}
  0x21   :  { %s694_s0 = smov 192   ;;  %s695_s3 = smov 12  }
  0x22   :  { %31 = dma.hbm_to_vmem [thread:$0]  %s790_s1, 3072, %s715_s12, [#allocation7], %s694_s0, %s694_s0, %s695_s3  }
  0x23   :  { %686 = dma.done.wait [#allocation4], 128  }
  0x24   :  { %687 = vsyncadd [#allocation4], 4294967168 }
  0x25   :  { %688 = dma.done.wait [#allocation7], 3072  }
  0x26   :  { %689 = vsyncadd [#allocation7], 4294964224  ;;  %v47_v0 = vlaneseq  ;;  %v696_v1 = vmov 0.0   ;;  %v748_v7 = vld [vmem:[#allocation3] sm:$0xff]  ;;  %v586_v11 = vld [vmem:[#allocation6 + $0x4] ss:$12 sps:$4 sm:$0xff]  }
  0x27   :  { %558 = vmatprep.subr.bf16.mxu1 %v696_v1  ;;  %v588_v12 = vld [vmem:[#allocation6] ss:$12 sps:$4 sm:$0xff]   ;;  %v589_v14 = vld [vmem:[#allocation6 + $0x8] ss:$12 sps:$4 sm:$0xff]   ;;  %391 = vmatprep.subr.bf16.mxu0 %v586_v11  ;;  %v592_v18 = vld [vmem:[#allocation6 + $0x18] ss:$12 sps:$4 sm:$0xff]  }
  0x28   :  { %v53_v2 = vshrl.u32 %v47_v0, 7  ;;  %v590_v17 = vld [vmem:[#allocation6 + $0x1c] ss:$12 sps:$4 sm:$0xff]   ;;  %559 = vmatpush3.bf16.msra.mxu1 %v589_v14  ;;  %392 = vmatpush1.bf16.msra.mxu0 %v588_v12  ;;  %v593_v19 = vld [vmem:[#allocation6 + $0x20] ss:$12 sps:$4 sm:$0xff]   ;;  %v697_v40 = vmov 0  }
  0x29   :  { %560 = vmatprep.subr.bf16.mxu1 %v696_v1  ;;  %393 = vmatprep.subr.bf16.mxu0 %v590_v17  ;;  %v594_v20 = vld [vmem:[#allocation6 + $0x34] ss:$12 sps:$4 sm:$0xff]   ;;  %v597_v25 = vld [vmem:[#allocation6 + $0x38] ss:$12 sps:$4 sm:$0xff]   ;;  %v596_v26 = vld [vmem:[#allocation6 + $0x30] ss:$12 sps:$4 sm:$0xff]  }
  0x2a   :  { %v68_v3 = vsub.s32 2, %v53_v2  ;;  %v54_v4 = vsub.s32 0, %v53_v2  ;;  %v75_v5 = vsub.s32 3, %v53_v2  ;;  %v61_v6 = vsub.s32 1, %v53_v2  ;;  %v598_v27 = vld [vmem:[#allocation6 + $0x4c] ss:$12 sps:$4 sm:$0xff]   ;;  %423 = vmatprep.mubr.bf16.mxu0 %v697_v40 }
  0x2b   :  { %v89_v8 = vsub.s32 5, %v53_v2  ;;  %v82_v13 = vsub.s32 4, %v53_v2  ;;  %v103_v23 = vsub.s32 7, %v53_v2  ;;  %v96_v24 = vsub.s32 6, %v53_v2  ;;  %v600_v30 = vld [vmem:[#allocation6 + $0x48] ss:$12 sps:$4 sm:$0xff]  }
  0x2c   :  { %v69_v9 = vrot.slane %v748_v7, %v68_v3  ;;  %v55_v10 = vrot.slane %v748_v7, %v54_v4  ;;  %v76_v15 = vrot.slane %v748_v7, %v75_v5  ;;  %v62_v16 = vrot.slane %v748_v7, %v61_v6  ;;  %561 = vmatpush3.bf16.msra.mxu1 %v593_v19  ;;  %v601_v31 = vld [vmem:[#allocation6 + $0x50] ss:$12 sps:$4 sm:$0xff]   ;;  %v605_v33 = vld [vmem:[#allocation6 + $0x68] ss:$12 sps:$4 sm:$0xff]   ;;  %v604_v34 = vld [vmem:[#allocation6 + $0x60] ss:$12 sps:$4 sm:$0xff]  }
  0x2d   :  { %v90_v21 = vrot.slane %v748_v7, %v89_v8  ;;  %v83_v22 = vrot.slane %v748_v7, %v82_v13  ;;  %394 = vmatpush1.bf16.msra.mxu0 %v592_v18  ;;  %562 = vmatprep.subr.bf16.mxu1 %v696_v1  ;;  %v104_v28 = vrot.slane %v748_v7, %v103_v23  ;;  %v602_v32 = vld [vmem:[#allocation6 + $0x64] ss:$12 sps:$4 sm:$0xff]   ;;  %v606_v35 = vld [vmem:[#allocation6 + $0x7c] ss:$12 sps:$4 sm:$0xff]   ;;  %v609_v36 = vld [vmem:[#allocation6 + $0x80] ss:$12 sps:$4 sm:$0xff]  }
  0x2e   :  { %71 = vbcast.lane.b32.xlu1 %v69_v9, 256  ;;  %57 = vbcast.lane.b32.xlu0 %v55_v10, 256  ;;  %v97_v29 = vrot.slane %v748_v7, %v96_v24  ;;  %v608_v37 = vld [vmem:[#allocation6 + $0x78] ss:$12 sps:$4 sm:$0xff]   ;;  %v610_v38 = vld [vmem:[#allocation6 + $0x94] ss:$12 sps:$4 sm:$0xff]  }
  0x2f   :  { %395 = vmatprep.subr.bf16.mxu0 %v594_v20  ;;  %v613_v39 = vld [vmem:[#allocation6 + $0x98] ss:$12 sps:$4 sm:$0xff]   ;;  %v612_v41 = vld [vmem:[#allocation6 + $0x90] ss:$12 sps:$4 sm:$0xff]   ;;  %vm698_vm0 = vmmov 0   ;;  %vm482_vm1 = vcmp.ge.s32.totalorder %v748_v7, 0 }
  0x30   :  { %563 = vmatpush3.bf16.msra.mxu1 %v597_v25  ;;  %v614_v42 = vld [vmem:[#allocation6 + $0xac] ss:$12 sps:$4 sm:$0xff]   ;;  %574 = vmatprep.mubr.msk.bf16.mxu1 %vm698_vm0, %v696_v1  ;;  %v617_v43 = vld [vmem:[#allocation6 + $0xb0] ss:$12 sps:$4 sm:$0xff]   ;;  %v616_v44 = vld [vmem:[#allocation6 + $0xa8] ss:$12 sps:$4 sm:$0xff]  }
  0x31   :  { %396 = vmatpush1.bf16.msra.mxu0 %v596_v26  ;;  %564 = vmatprep.subr.bf16.mxu1 %v696_v1  ;;  %v548_v45 = vsel %vm482_vm1, 1.0, %v696_v1  ;;  %vm485_vm2 = vcmask 64512   ;;  %v48_v47 = vand.u32 127, %v47_v0  ;;  %vm247_vm11 = vcmask 1041409   ;;  %s699_s1 = smov [#allocation8]  }
  0x32   :  { %78 = vbcast.lane.b32.xlu1 %v76_v15, 256  ;;  %64 = vbcast.lane.b32.xlu0 %v62_v16, 256  ;;  %v486_v46 = vsel %vm485_vm2, %v548_v45, 0.0  ;;  %vm249_vm12 = vcmask 1042434   ;;  %vm251_vm13 = vcmask 1043459   ;;  %vm253_vm14 = vcmask 1044484  }
  0x33   :  { %397 = vmatprep.subr.bf16.mxu0 %v598_v27  ;;  %vm255_vm15 = vcmask 1045509   ;;  %vm257_vm0 = vcmask 1046534   ;;  %vm259_vm1 = vcmask 1047559   ;;  %s506_s6 = sshll.u32 %s699_s1, 4  ;;  %s507_s6 = int_to_ptr.vmem [resolvable:$true] %s506_s6 }
  0x34   :  { %565 = vmatpush3.bf16.msra.mxu1 %v601_v31  ;;  %s664_s7 = scalar_lea.vmem %s507_s6, 384  ;;  %p669_p3 = scmp.lt.s32.totalorder %s507_s6, %s507_s6 }
  0x35   :  { %398 = vmatpush1.bf16.msra.mxu0 %v600_v30  ;;  %566 = vmatprep.subr.bf16.mxu1 %v696_v1  ;;  %p665_p2 = scmp.ne.s32.totalorder %s507_s6, %s664_s7  ;;  %p670_p4 = scmp.lt.s32.totalorder %s664_s7, %s664_s7 }
  0x36   :  { %92 = vbcast.lane.b32.xlu1 %v90_v21, 256  ;;  %85 = vbcast.lane.b32.xlu0 %v83_v22, 256 }
  0x37   :  { %399 = vmatprep.subr.bf16.mxu0 %v602_v32  ;;  %p671_p5 = por %p670_p4, %p669_p3 }
  0x38   :  { %567 = vmatpush3.bf16.msra.mxu1 %v605_v33 }
  0x39   :  { %400 = vmatpush1.bf16.msra.mxu0 %v604_v34  ;;  %568 = vmatprep.subr.bf16.mxu1 %v696_v1  ;;  %p672_p6 = pnand %p671_p5, %p665_p2 }
  0x3a   :  { %106 = vbcast.lane.b32.xlu1 %v104_v28, 256  ;;  %99 = vbcast.lane.b32.xlu0 %v97_v29, 256 }
  0x3b   :  { %401 = vmatprep.subr.bf16.mxu0 %v606_v35 }
  0x3c   :  { %569 = vmatpush3.bf16.msra.mxu1 %v609_v36 }
  0x3d   :  { %402 = vmatpush1.bf16.msra.mxu0 %v608_v37  ;;  %570 = vmatprep.subr.bf16.mxu1 %v696_v1 }
  0x3e   :  { %403 = vmatprep.subr.bf16.mxu0 %v610_v38 }
  0x40   :  { %571 = vmatpush3.bf16.msra.mxu1 %v613_v39 }
  0x41   :  { %404 = vmatpush1.bf16.msra.mxu0 %v612_v41  ;;  %572 = vmatprep.subr.bf16.mxu1 %v696_v1 }
  0x42   :  { %405 = vmatprep.subr.bf16.mxu0 %v614_v42 }
  0x44   :  { %573 = vmatpush3.bf16.msra.mxu1 %v617_v43 }
  0x45   :  { %406 = vmatpush1.bf16.msra.mxu0 %v616_v44 }
  0x59   :  { %487 = vadd.xlane.f32.xlu0 %v486_v46 }
  0xa0   :  { %v72_v48 = vpop.permute.xlu1 %71  ;;  %v58_v49 = vpop.permute.xlu0 %57 }
  0xa1   :  { %vm110_vm3 = vcmp.eq.s32.totalorder %v72_v48, %v48_v47  ;;  %vm108_vm4 = vcmp.eq.s32.totalorder %v58_v49, %v48_v47 }
  0xa2   :  { %v518_v50 = vsel %vm110_vm3, 1.0, %v696_v1  ;;  %v516_v51 = vsel %vm108_vm4, 1.0, %v696_v1 }
  0xa3   :  { %v144_v52 = vrot.slane %v518_v50, 4  ;;  %v132_v53 = vrot.slane %v516_v51, 4 }
  0xa4   :  { %v79_v54 = vpop.permute.xlu1 %78  ;;  %v65_v55 = vpop.permute.xlu0 %64 }
  0xa5   :  { %v145_v56 = vadd.f32 %v518_v50, %v144_v52  ;;  %v133_v57 = vadd.f32 %v516_v51, %v132_v53  ;;  %vm111_vm5 = vcmp.eq.s32.totalorder %v79_v54, %v48_v47  ;;  %vm109_vm6 = vcmp.eq.s32.totalorder %v65_v55, %v48_v47 }
  0xa6   :  { %v519_v58 = vsel %vm111_vm5, 1.0, %v696_v1  ;;  %v517_v59 = vsel %vm109_vm6, 1.0, %v696_v1 }
  0xa7   :  { %v146_v60 = vrot.slane %v145_v56, 2  ;;  %v134_v61 = vrot.slane %v133_v57, 2  ;;  %v150_v62 = vrot.slane %v519_v58, 4  ;;  %v138_v63 = vrot.slane %v517_v59, 4 }
  0xa8   :  { %v93_v0 = vpop.permute.xlu1 %92  ;;  %v86_v2 = vpop.permute.xlu0 %85 }
  0xa9   :  { %v147_v3 = vadd.f32 %v146_v60, %v145_v56  ;;  %v135_v4 = vadd.f32 %v134_v61, %v133_v57  ;;  %v151_v5 = vadd.f32 %v519_v58, %v150_v62  ;;  %v139_v6 = vadd.f32 %v517_v59, %v138_v63 }
  0xaa   :  { %vm113_vm7 = vcmp.eq.s32.totalorder %v93_v0, %v48_v47  ;;  %vm112_vm8 = vcmp.eq.s32.totalorder %v86_v2, %v48_v47 }
  0xab   :  { %v148_v7 = vrot.slane %v147_v3, 1  ;;  %v136_v8 = vrot.slane %v135_v4, 1  ;;  %v152_v9 = vrot.slane %v151_v5, 2  ;;  %v140_v10 = vrot.slane %v139_v6, 2 }
  0xac   :  { %v521_v11 = vsel %vm113_vm7, 1.0, %v696_v1  ;;  %v520_v12 = vsel %vm112_vm8, 1.0, %v696_v1  ;;  %v107_v13 = vpop.permute.xlu1 %106  ;;  %v100_v14 = vpop.permute.xlu0 %99 }
  0xad   :  { %v137_v15 = vadd.f32 %v136_v8, %v135_v4  ;;  %v153_v16 = vadd.f32 %v152_v9, %v151_v5  ;;  %v141_v17 = vadd.f32 %v140_v10, %v139_v6  ;;  %v162_v18 = vrot.slane %v521_v11, 4 }
  0xae   :  { %v156_v19 = vrot.slane %v520_v12, 4  ;;  %vm115_vm9 = vcmp.eq.s32.totalorder %v107_v13, %v48_v47  ;;  %vm114_vm10 = vcmp.eq.s32.totalorder %v100_v14, %v48_v47  ;;  %v149_v20 = vadd.f32 %v148_v7, %v147_v3 }
  0xaf   :  { %v154_v21 = vrot.slane %v153_v16, 1  ;;  %v142_v22 = vrot.slane %v141_v17, 1  ;;  %v163_v23 = vadd.f32 %v521_v11, %v162_v18  ;;  %v523_v25 = vsel %vm115_vm9, 1.0, %v696_v1 }
  0xb0   :  { %v157_v24 = vadd.f32 %v520_v12, %v156_v19  ;;  %v522_v26 = vsel %vm114_vm10, 1.0, %v696_v1  ;;  %v191_v27 = vpack.c.bf16 %v137_v15, %v137_v15  ;;  %v174_v32 = vrot.slane %v523_v25, 4 }
  0xb1   :  { %v155_v28 = vadd.f32 %v154_v21, %v153_v16  ;;  %v143_v29 = vadd.f32 %v142_v22, %v141_v17  ;;  %v164_v30 = vrot.slane %v163_v23, 2  ;;  %v168_v33 = vrot.slane %v522_v26, 4 }
  0xb2   :  { %v158_v31 = vrot.slane %v157_v24, 2  ;;  %v193_v34 = vpack.c.bf16 %v149_v20, %v149_v20  ;;  %v175_v38 = vadd.f32 %v523_v25, %v174_v32  ;;  %v239_v40 = vunpack.c.l.b16 %v191_v27 }
  0xb3   :  { %v192_v35 = vpack.c.bf16 %v143_v29, %v143_v29  ;;  %v165_v36 = vadd.f32 %v164_v30, %v163_v23  ;;  %v169_v39 = vadd.f32 %v522_v26, %v168_v33  ;;  %v194_v41 = vpack.c.bf16 %v155_v28, %v155_v28 }
  0xb4   :  { %v159_v37 = vadd.f32 %v158_v31, %v157_v24  ;;  %v176_v44 = vrot.slane %v175_v38, 2  ;;  %v241_v46 = vunpack.c.l.b16 %v193_v34 }
  0xb5   :  { %v240_v42 = vunpack.c.l.b16 %v192_v35  ;;  %v166_v43 = vrot.slane %v165_v36, 1  ;;  %v170_v45 = vrot.slane %v169_v39, 2  ;;  %v242_v53 = vunpack.c.l.b16 %v194_v41 }
  0xb6   :  { %v160_v1 = vrot.slane %v159_v37, 1  ;;  %v177_v50 = vadd.f32 %v176_v44, %v175_v38 }
  0xb7   :  { %v248_v47 = vsel %vm247_vm11, %v240_v42, %v239_v40  ;;  %v167_v48 = vadd.f32 %v166_v43, %v165_v36  ;;  %v171_v52 = vadd.f32 %v170_v45, %v169_v39 }
  0xb8   :  { %v161_v49 = vadd.f32 %v160_v1, %v159_v37  ;;  %v250_v51 = vsel %vm249_vm12, %v241_v46, %v248_v47  ;;  %v178_v56 = vrot.slane %v177_v50, 1 }
  0xb9   :  { %v196_v54 = vpack.c.bf16 %v167_v48, %v167_v48  ;;  %v172_v57 = vrot.slane %v171_v52, 1  ;;  %v252_v60 = vsel %vm251_vm13, %v242_v53, %v250_v51 }
  0xba   :  { %v195_v55 = vpack.c.bf16 %v161_v49, %v161_v49  ;;  %v179_v59 = vadd.f32 %v178_v56, %v177_v50 }
  0xbb   :  { %v173_v61 = vadd.f32 %v172_v57, %v171_v52  ;;  %v244_v62 = vunpack.c.l.b16 %v196_v54 }
  0xbc   :  { %v243_v58 = vunpack.c.l.b16 %v195_v55  ;;  %v198_v63 = vpack.c.bf16 %v179_v59, %v179_v59 }
  0xbd   :  { %v197_v0 = vpack.c.bf16 %v173_v61, %v173_v61 }
  0xbe   :  { %v254_v2 = vsel %vm253_vm14, %v243_v58, %v252_v60  ;;  %v246_v3 = vunpack.c.l.b16 %v198_v63 }
  0xbf   :  { %v245_v4 = vunpack.c.l.b16 %v197_v0  ;;  %v256_v5 = vsel %vm255_vm15, %v244_v62, %v254_v2 }
  0xc1   :  { %v258_v6 = vsel %vm257_vm0, %v245_v4, %v256_v5 }
  0xc2   :  { %v260_v7 = vsel %vm259_vm1, %v246_v3, %v258_v6 }
  0xc3   :  { %v261_v8 = vpack.c.b16 %v260_v7, %v260_v7 }
  0xc5   :  { %424 = vmatmul.mubr.bf16.vlgmr.msra.gmra.mrb[0].mxu0 %v261_v8  ;;  %575 = vmatmul.mubr.bf16.vlgmr.msra.gmra.mrb[0].mxu1 %v261_v8 }
  0xe6   :  { %v488_v9 = vpop.xlane.xlu0 %487 }
  0xe7   :  { %v489_v10 = vmax.f32 %v488_v9, 1.0 }
  0xe9   :  { %618 = vrcp.f32 %v489_v10 }
  0xf3   :  { %v619_v11 = vpop.eup %618 }
 0x198   :  { %v425_v12 = vpop.f32.mrb[0].mxu0  ;;  %v466_v13 = vpop.f32.mrb[0].mxu1 }
 0x199   :  { %v494_v14 = vmul.f32 %v619_v11, %v425_v12  ;;  %v496_v15 = vmul.f32 %v619_v11, %v466_v13  ;;  %v427_v16 = vpop.f32.mrb[1].mxu0  ;;  %v576_v17 = vpop.f32.mrb[1].mxu1 }
 0x19a   :  { %v495_v18 = vmul.f32 %v619_v11, %v427_v16  ;;  %v429_v19 = vpop.f32.mrb[2].mxu0  ;;  %v469_v20 = vpop.f32.mrb[2].mxu1 }
 0x19b   :  { %497 = vst [vmem:[#allocation8] sm:$0xff] %v494_v14  ;;  %499 = vst [vmem:[#allocation8 + $0x10] sm:$0xff] %v496_v15  ;;  %v430_v21 = vpop.f32.mrb[3].mxu0  ;;  %v577_v22 = vpop.f32.mrb[3].mxu1 }
 0x19c   :  { %498 = vst [vmem:[#allocation8 + $0x8] sm:$0xff] %v495_v18 }
 0x19d   :  { %675 = shalt.err (!%p672_p6)
}
 0x19e   :  { %s676_s10 = scalar_lea.hbm %s791_s2, 384 }
 0x19f   :  { %p677_p7 = scmp.ne.s32.totalorder %s791_s2, %s676_s10  ;;  %p680_p8 = scmp.lt.u32.totalorder %s676_s10, %s791_s2 }
 0x1a1   :  { %p682_p9 = pnand %p680_p8, %p677_p7 }
 0x1a3   :  { %685 = shalt.err (!%p682_p9)
}
 0x1a4   :  { %509 = dma.vmem_to_hbm [thread:$0]  %s507_s6, 384, %s791_s2, [#allocation5]  }
 0x1a5   :  { %690 = dma.done.wait [#allocation5], 384  }
 0x1a6   :  { %691 = vsyncadd [#allocation5], 4294966912 }
 0x1a7   :  { %513 = vsyncpa [#allocation4], 1 }
 0x1a8   :  { %514 = vsyncpa [#allocation7], 1 }
 0x1a9   :  { %515 = vsyncpa [#allocation5], 1 }

</bundles_post_ra>
